<compile_context>
chip_gen: v7x
topology: tpu7x:2x2x1
jax: 0.10.0
libtpu: 0.0.40
codegen_flags: <defaults>
</compile_context>

<pallas_src>
import math
import functools

import jax
import jax.numpy as jnp
from jax import lax
from jax.experimental import pallas as pl
from jax.experimental.pallas import tpu as pltpu


def _num_tensorcores_per_chip():
    """Trace-time heuristic: only v7x exposes 2 TensorCores per Pallas device."""
    try:
        kind = jax.devices()[0].device_kind.lower()
    except Exception:
        return 1
    return 2 if ("v7" in kind or "7x" in kind) else 1


def _head_kernel(x_ref, w1_ref, b1_ref, w2_ref, b2_ref, o_ref, *, approximate):
    # x_ref : (tm, in_C)       VMEM tile of tokens (input dtype)
    # w1_ref: (hidden, in_C)   full weight, PyTorch layout (f32 or bf16)
    # b1_ref: (hidden, 1)      f32
    # w2_ref: (out_C, hidden)  full weight, PyTorch layout (f32 or bf16)
    # b2_ref: (out_C, 1)       f32
    # o_ref : (out_C, tm)      lane-dense transposed output tile
    x = x_ref[...].astype(w1_ref.dtype)                     # bf16 cast is in-VMEM, free-ish

    # h_t[j, m] = sum_i W1[j, i] * x[m, i]   -> (hidden, tm)  (NT matmul on MXU)
    h = lax.dot_general(
        w1_ref[...], x, (((1,), (1,)), ((), ())),
        preferred_element_type=jnp.float32,
    )
    h = h + b1_ref[...]                                     # f32, broadcast (hidden, 1)

    if approximate:
        # tanh approximation -> EUP slot (slight numeric deviation vs nn.GELU()).
        h = jax.nn.gelu(h, approximate=True)
    else:
        # Exact GELU (nn.GELU default): 0.5 * x * (1 + erf(x / sqrt(2)))
        h = 0.5 * h * (1.0 + lax.erf(h * (1.0 / math.sqrt(2.0))))

    # y_t = W2 @ h_t  -> (out_C, tm), already in lane-dense output layout.
    y = jnp.dot(w2_ref[...], h.astype(w2_ref.dtype),
                preferred_element_type=jnp.float32)
    y = y + b2_ref[...]                                     # f32, broadcast (out_C, 1)

    o_ref[...] = y.astype(o_ref.dtype)


def prepare_head_params(w1, b1, w2, b2, compute_dtype=jnp.bfloat16):
    """One-time param prep (hoisted out of the per-call path).

    Weights go to `compute_dtype` (bf16 default: native MXU rate on v5e/v6e/v7x,
    half the weight HBM/VMEM footprint); biases stay f32 column vectors so the
    bias add + GELU run in f32 after the f32-accumulated matmul.
    """
    hidden = w1.shape[0]
    out_C = w2.shape[0]
    return (
        w1.astype(compute_dtype),                    # (hidden, in_C)
        b1.reshape(hidden, 1).astype(jnp.float32),   # (hidden, 1)
        w2.astype(compute_dtype),                    # (out_C, hidden)
        b2.reshape(out_C, 1).astype(jnp.float32),    # (out_C, 1)
    )


@functools.partial(
    jax.jit, static_argnames=("tm", "approximate", "channels_last_output")
)
def head_forward(x, w1, b1_col, w2, b2_col, *, tm=4096, approximate=False,
                 channels_last_output=True):
    """x: (..., in_C) -> (..., out_C) [or (out_C, ...) if channels_last_output=False]."""
    in_C = x.shape[-1]
    hidden = w1.shape[0]              # w1: (hidden, in_C)
    out_C = w2.shape[0]               # w2: (out_C, hidden)

    lead = x.shape[:-1]
    M = math.prod(lead) if lead else 1          # static Python int (no tracer)
    x2d = x.reshape(M, in_C)

    # Tile size: multiple of 128 (lane-dense transposed output blocks), no larger
    # than one (padded) block of M. Even tm=8192 is only ~4 MiB/buffer of padded
    # f32 x (2 MiB bf16), comfortably under every generation's scoped VMEM.
    tm = max(128, (int(tm) // 128) * 128)
    tm = min(tm, pl.cdiv(M, 128) * 128)
    # Megacore split only where it helps: v7x has 2 TensorCores per chip, so make
    # sure the "parallel" grid axis has at least one tile per core. v5e/v6e have a
    # single TC -- splitting there only adds a ~0.35 us grid step of overhead.
    num_tc = _num_tensorcores_per_chip()
    if num_tc > 1 and pl.cdiv(M, tm) < num_tc:
        tm = max(128, pl.cdiv(pl.cdiv(M, num_tc), 128) * 128)
    grid = (pl.cdiv(M, tm),)                    # ragged last block handled by Pallas

    kernel = functools.partial(_head_kernel, approximate=approximate)

    out_t = pl.pallas_call(
        kernel,
        out_shape=jax.ShapeDtypeStruct((out_C, M), x.dtype),
        grid_spec=pltpu.PrefetchScalarGridSpec(
            num_scalar_prefetch=0,
            grid=grid,
            in_specs=[
                pl.BlockSpec((tm, in_C), lambda i: (i, 0)),       # x tile
                pl.BlockSpec((hidden, in_C), lambda i: (0, 0)),   # full W1
                pl.BlockSpec((hidden, 1), lambda i: (0, 0)),      # b1 column
                pl.BlockSpec((out_C, hidden), lambda i: (0, 0)),  # full W2
                pl.BlockSpec((out_C, 1), lambda i: (0, 0)),       # b2 column
            ],
            out_specs=pl.BlockSpec((out_C, tm), lambda i: (0, i)),
        ),
        compiler_params=pltpu.CompilerParams(
            dimension_semantics=("parallel",),
        ),
    )(x2d, w1, b1_col, w2, b2_col)

    if channels_last_output:
        # (out_C, M) -> (..., out_C): matches the PyTorch module's output layout.
        return out_t.T.reshape(*lead, out_C)
    # Lane-dense layout, no extra transpose kernel (consumer must accept it).
    return out_t.reshape(out_C, *lead)


def init_head_params(key, in_C=36, out_C=3, dtype=jnp.float32):
    """Deterministic init mimicking nn.Linear defaults (uniform +/- 1/sqrt(fan_in))."""
    hidden = in_C * 2
    k1, k2, k3, k4 = jax.random.split(key, 4)
    lim1 = 1.0 / math.sqrt(in_C)
    lim2 = 1.0 / math.sqrt(hidden)
    w1 = jax.random.uniform(k1, (hidden, in_C), dtype, -lim1, lim1)
    b1 = jax.random.uniform(k2, (hidden,), dtype, -lim1, lim1)
    w2 = jax.random.uniform(k3, (out_C, hidden), dtype, -lim2, lim2)
    b2 = jax.random.uniform(k4, (out_C,), dtype, -lim2, lim2)
    return w1, b1, w2, b2


def head_reference(x, w1, b1, w2, b2):
    h = jnp.einsum("...i,oi->...o", x, w1) + b1
    h = 0.5 * h * (1.0 + lax.erf(h / math.sqrt(2.0)))
    return jnp.einsum("...i,oi->...o", h, w2) + b2


if __name__ == "__main__":
    key = jax.random.PRNGKey(0)
    kx, kp = jax.random.split(key)

    in_C, out_C = 36, 3
    B, N = 2, 64                    # small batch of token sequences, channels-last
    x = jax.random.normal(kx, (B, N, in_C), dtype=jnp.float32)

    w1, b1, w2, b2 = init_head_params(kp, in_C=in_C, out_C=out_C)
    ref = head_reference(x, w1, b1, w2, b2)

    # f32 compute path: bit-faithful to the nn.Linear/nn.GELU reference.
    params_f32 = prepare_head_params(w1, b1, w2, b2, compute_dtype=jnp.float32)
    out_f32 = jax.block_until_ready(head_forward(x, *params_f32))
    assert out_f32.shape == (B, N, out_C), out_f32.shape
    assert jnp.allclose(out_f32, ref, atol=1e-4, rtol=1e-4), float(
        jnp.max(jnp.abs(out_f32 - ref))
    )

    # bf16 MXU path (production default): f32 accumulation, looser tolerance.
    params_bf16 = prepare_head_params(w1, b1, w2, b2, compute_dtype=jnp.bfloat16)
    out_bf16 = jax.block_until_ready(head_forward(x, *params_bf16))
    assert out_bf16.shape == (B, N, out_C), out_bf16.shape
    assert jnp.allclose(out_bf16, ref, atol=3e-2, rtol=3e-2), float(
        jnp.max(jnp.abs(out_bf16 - ref))
    )

    print("KERNEL_OK")
</pallas_src>

<mosaic_0001>
module attributes {stable_mosaic.version = 11 : i64} {
  func.func @_head_kernel(%arg0: i32, %arg1: memref<128x36xf32, #tpu.memory_space<vmem>>, %arg2: memref<72x36xf32, #tpu.memory_space<vmem>>, %arg3: memref<72x1xf32, #tpu.memory_space<vmem>>, %arg4: memref<3x72xf32, #tpu.memory_space<vmem>>, %arg5: memref<3x1xf32, #tpu.memory_space<vmem>>, %arg6: memref<3x128xf32, #tpu.memory_space<vmem>>) attributes {dimension_semantics = [#tpu.dimension_semantics<parallel>], iteration_bounds = array<i64: 1>, scalar_prefetch = 0 : i64, scratch_operands = 0 : i64, tpu.core_type = #tpu.core_type<tc>, window_params = [{transform_indices = @transform_0, window_bounds = array<i64: 128, 36>}, {pipeline_mode = #tpu.pipeline_mode<synchronous>, transform_indices = @transform_1, window_bounds = array<i64: 72, 36>}, {pipeline_mode = #tpu.pipeline_mode<synchronous>, transform_indices = @transform_2, window_bounds = array<i64: 72, 1>}, {pipeline_mode = #tpu.pipeline_mode<synchronous>, transform_indices = @transform_3, window_bounds = array<i64: 3, 72>}, {pipeline_mode = #tpu.pipeline_mode<synchronous>, transform_indices = @transform_4, window_bounds = array<i64: 3, 1>}, {transform_indices = @transform_5, window_bounds = array<i64: 3, 128>}]} {
    %c0 = arith.constant 0 : index
    %c0_0 = arith.constant 0 : index
    %0 = vector.load %arg1[%c0, %c0_0] : memref<128x36xf32, #tpu.memory_space<vmem>>, vector<128x36xf32>
    %c0_1 = arith.constant 0 : index
    %c0_2 = arith.constant 0 : index
    %1 = vector.load %arg2[%c0_1, %c0_2] : memref<72x36xf32, #tpu.memory_space<vmem>>, vector<72x36xf32>
    %cst = arith.constant dense<0.000000e+00> : vector<72x128xf32>
    %2 = tpu.matmul %1, %0, %cst {dimension_numbers = #tpu.dot_dimension_numbers<[1], [1], [0], [0], [0, 0, 1, 0], [], []>} : vector<72x36xf32>, vector<128x36xf32>, vector<72x128xf32> -> vector<72x128xf32>
    %c0_3 = arith.constant 0 : index
    %c0_4 = arith.constant 0 : index
    %3 = vector.load %arg3[%c0_3, %c0_4] : memref<72x1xf32, #tpu.memory_space<vmem>>, vector<72x1xf32>
    %4 = vector.broadcast %3 : vector<72x1xf32> to vector<72x128xf32>
    %5 = arith.addf %2, %4 : vector<72x128xf32>
    %cst_5 = arith.constant 5.000000e-01 : f32
    %6 = vector.broadcast %cst_5 : f32 to vector<72x128xf32>
    %7 = arith.mulf %6, %5 : vector<72x128xf32>
    %cst_6 = arith.constant 0.707106769 : f32
    %8 = vector.broadcast %cst_6 : f32 to vector<72x128xf32>
    %9 = arith.mulf %5, %8 : vector<72x128xf32>
    %10 = math.erf %9 : vector<72x128xf32>
    %cst_7 = arith.constant 1.000000e+00 : f32
    %11 = vector.broadcast %cst_7 : f32 to vector<72x128xf32>
    %12 = arith.addf %11, %10 : vector<72x128xf32>
    %13 = arith.mulf %7, %12 : vector<72x128xf32>
    %c0_8 = arith.constant 0 : index
    %c0_9 = arith.constant 0 : index
    %14 = vector.load %arg4[%c0_8, %c0_9] : memref<3x72xf32, #tpu.memory_space<vmem>>, vector<3x72xf32>
    %cst_10 = arith.constant dense<0.000000e+00> : vector<3x128xf32>
    %15 = tpu.matmul %14, %13, %cst_10 {dimension_numbers = #tpu.dot_dimension_numbers<[1], [0], [0], [1], [0, 0, 1, 1], [], []>} : vector<3x72xf32>, vector<72x128xf32>, vector<3x128xf32> -> vector<3x128xf32>
    %c0_11 = arith.constant 0 : index
    %c0_12 = arith.constant 0 : index
    %16 = vector.load %arg5[%c0_11, %c0_12] : memref<3x1xf32, #tpu.memory_space<vmem>>, vector<3x1xf32>
    %17 = vector.broadcast %16 : vector<3x1xf32> to vector<3x128xf32>
    %18 = arith.addf %15, %17 : vector<3x128xf32>
    %c0_13 = arith.constant 0 : index
    %c0_14 = arith.constant 0 : index
    %19 = vector.load %arg6[%c0_13, %c0_14] : memref<3x128xf32, #tpu.memory_space<vmem>>, vector<3x128xf32>
    tpu.vector_store %arg6[%c0_13, %c0_14], %18 {strides = array<i32>} : memref<3x128xf32, #tpu.memory_space<vmem>>, vector<3x128xf32>,
    return
  }
  func.func @transform_0(%arg0: i32) -> (i32, i32) {
    %c0_i32 = arith.constant 0 : i32
    %c0_i32_0 = arith.constant 0 : i32
    return %arg0, %c0_i32 : i32, i32
  }
  func.func @transform_1(%arg0: i32) -> (i32, i32) {
    %c0_i32 = arith.constant 0 : i32
    %c0_i32_0 = arith.constant 0 : i32
    %c0_i32_1 = arith.constant 0 : i32
    return %c0_i32, %c0_i32_0 : i32, i32
  }
  func.func @transform_2(%arg0: i32) -> (i32, i32) {
    %c0_i32 = arith.constant 0 : i32
    %c0_i32_0 = arith.constant 0 : i32
    %c0_i32_1 = arith.constant 0 : i32
    return %c0_i32, %c0_i32_0 : i32, i32
  }
  func.func @transform_3(%arg0: i32) -> (i32, i32) {
    %c0_i32 = arith.constant 0 : i32
    %c0_i32_0 = arith.constant 0 : i32
    %c0_i32_1 = arith.constant 0 : i32
    return %c0_i32, %c0_i32_0 : i32, i32
  }
  func.func @transform_4(%arg0: i32) -> (i32, i32) {
    %c0_i32 = arith.constant 0 : i32
    %c0_i32_0 = arith.constant 0 : i32
    %c0_i32_1 = arith.constant 0 : i32
    return %c0_i32, %c0_i32_0 : i32, i32
  }
  func.func @transform_5(%arg0: i32) -> (i32, i32) {
    %c0_i32 = arith.constant 0 : i32
    %c0_i32_0 = arith.constant 0 : i32
    return %c0_i32, %arg0 : i32, i32
  }
}

</mosaic_0001>

<bundles_post_ra>
// kernel: head_forward.1
= control target key start
LH: loop header
LB: loop body
LE: loop exit
PB: predicated region body
PF: predicated region fallthrough
CT: control target
= control target key end

     0   :  { %vm99_vm0 = vcmask 293888   ;;  %v625_v0 = vmov 0.0|0.0   ;;  %vm626_vm2 = vmmov 0   ;;  %v627_v4 = vmov 0.0   ;;  %s834_s0 = inlined_call_operand.vmem [shape: f32[128,36], index: 0, kind: input, shape index: {}]   ;;  %s835_s2 = inlined_call_operand.vmem [shape: f32[72,1], index: 2, kind: input, shape index: {}]   ;;  %s836_s4 = inlined_call_operand.vmem [shape: f32[3,1], index: 4, kind: input, shape index: {}]   ;;  %s837_s1 = inlined_call_operand.vmem [shape: f32[72,36], index: 1, kind: input, shape index: {}]   ;;  %s838_s3 = inlined_call_operand.vmem [shape: f32[3,72], index: 3, kind: input, shape index: {}]   ;;  %s839_s5 = inlined_call_operand.vmem [shape: f32[3,128], index: 5, kind: output, shape index: {}]  }
   0x1   :  { %557 = vmatprep.subr.bf16.mxu0 %v625_v0  ;;  %v20_v1 = vld [vmem:[%s834_s0] sm:$0xff]  ;;  %v21_v2 = vld [vmem:[%s834_s0 + $0x8] sm:$0xff]  ;;  %vm668_vm1 = vmpackc.low %vm99_vm0, %vm99_vm0  ;;  %509 = vmatprep.mubr.msk.f32.mxu0 %vm626_vm2, %v627_v4  ;;  %v628_v6 = vmov 0   ;;  %vm337_vm3 = vcmask 588800  }
   0x2   :  { %v558_v5 = vpack.c.bf16 %v21_v2, %v20_v1  ;;  %605 = vset.pattern.permute.xlu0 %v628_v6  ;;  %606 = vset.pattern.permute.xlu1 %v628_v6  ;;  %v22_v7 = vld [vmem:[%s834_s0 + $0x10] sm:$0xff]  ;;  %v23_v8 = vld [vmem:[%s834_s0 + $0x18] sm:$0xff]  ;;  %v45_v10 = vld [vmem:[%s835_s2] sm:$0xff] }
   0x3   :  { %589 = vmatprep.subr.bf16.mxu1 %v625_v0  ;;  %554 = vmatprep.mubr.msk.f32.mxu1 %vm626_vm2, %v627_v4  ;;  %v562_v9 = vpack.c.bf16 %v23_v8, %v22_v7  ;;  %v47_v11 = vld [vmem:[%s835_s2 + $0x10] sm:$0xff]  ;;  %v46_v12 = vld [vmem:[%s835_s2 + $0x8] sm:$0xff]  ;;  %v48_v13 = vld [vmem:[%s835_s2 + $0x18] sm:$0xff] }
   0x4   :  { %560 = vmatpush3.bf16.xpose.msk.msra.mxu0 %vm668_vm1, %v558_v5  ;;  %56 = vperm.xlu0 %605, %v45_v10   ;;  %v24_v14 = vld [vmem:[%s834_s0 + $0x20] sm:$0xff]  ;;  %v25_v15 = vld [vmem:[%s834_s0 + $0x28] sm:$0xff]  ;;  %v51_v19 = vld [vmem:[%s835_s2 + $0x30] sm:$0xff] }
   0x5   :  { %561 = vmatprep.subr.bf16.mxu0 %v625_v0  ;;  %66 = vperm.xlu1 %606, %v47_v11   ;;  %v49_v16 = vld [vmem:[%s835_s2 + $0x20] sm:$0xff]  ;;  %v566_v17 = vpack.c.bf16 %v25_v15, %v24_v14  ;;  %v50_v18 = vld [vmem:[%s835_s2 + $0x28] sm:$0xff]  ;;  %v52_v20 = vld [vmem:[%s835_s2 + $0x38] sm:$0xff] }
   0x6   :  { %v26_v21 = vld [vmem:[%s834_s0 + $0x30] sm:$0xff]  ;;  %v27_v22 = vld [vmem:[%s834_s0 + $0x38] sm:$0xff]  ;;  %v53_v23 = vld [vmem:[%s835_s2 + $0x40] sm:$0xff] }
   0x7   :  { %v570_v24 = vpack.c.bf16 %v27_v22, %v26_v21  ;;  %v331_v25 = vld [vmem:[%s836_s4] sm:$0x7]  ;;  %v29_v27 = vld [vmem:[%s834_s0 + $0x48] sm:$0xff]  ;;  %v30_v29 = vld [vmem:[%s834_s0 + $0x50] sm:$0xff] }
   0x8   :  { %61 = vperm.xlu0 %605, %v46_v12   ;;  %v28_v26 = vld [vmem:[%s834_s0 + $0x40] sm:$0xff]  ;;  %v31_v30 = vld [vmem:[%s834_s0 + $0x58] sm:$0xff]  ;;  %v33_v33 = vld [vmem:[%s834_s0 + $0x68] sm:$0xff] }
   0x9   :  { %71 = vperm.xlu1 %606, %v48_v13   ;;  %v574_v28 = vpack.c.bf16 %v29_v27, %v28_v26  ;;  %v578_v31 = vpack.c.bf16 %v31_v30, %v30_v29  ;;  %v32_v32 = vld [vmem:[%s834_s0 + $0x60] sm:$0xff]  ;;  %v34_v35 = vld [vmem:[%s834_s0 + $0x70] sm:$0xff]  ;;  %v35_v36 = vld [vmem:[%s834_s0 + $0x78] sm:$0xff] }
   0xa   :  { %v582_v34 = vpack.c.bf16 %v33_v33, %v32_v32  ;;  %v586_v37 = vpack.c.bf16 %v35_v36, %v34_v35  ;;  %v36_v38 = vld [vmem:[%s837_s1] sm:$0xff]  ;;  %v37_v39 = vld [vmem:[%s837_s1 + $0x8] sm:$0xff]  ;;  %v38_v40 = vld [vmem:[%s837_s1 + $0x10] sm:$0xff] }
   0xb   :  { %v39_v41 = vld [vmem:[%s837_s1 + $0x18] sm:$0xff]  ;;  %v40_v42 = vld [vmem:[%s837_s1 + $0x20] sm:$0xff]  ;;  %v41_v43 = vld [vmem:[%s837_s1 + $0x28] sm:$0xff] }
   0xc   :  { %564 = vmatpush3.bf16.xpose.msk.msra.mxu0 %vm668_vm1, %v562_v9  ;;  %76 = vperm.xlu0 %605, %v49_v16   ;;  %v42_v44 = vld [vmem:[%s837_s1 + $0x30] sm:$0xff]  ;;  %v43_v45 = vld [vmem:[%s837_s1 + $0x38] sm:$0xff]  ;;  %v44_v46 = vld [vmem:[%s837_s1 + $0x40] sm:$0xff] }
   0xd   :  { %565 = vmatprep.subr.bf16.mxu0 %v625_v0  ;;  %81 = vperm.xlu1 %606, %v50_v18  }
  0x10   :  { %86 = vperm.xlu0 %605, %v51_v19  }
  0x11   :  { %91 = vperm.xlu1 %606, %v52_v20  }
  0x14   :  { %568 = vmatpush3.bf16.xpose.msk.msra.mxu0 %vm668_vm1, %v566_v17  ;;  %96 = vperm.xlu0 %605, %v53_v23  }
  0x15   :  { %569 = vmatprep.subr.bf16.mxu0 %v625_v0  ;;  %334 = vperm.xlu1 %606, %v331_v25  }
  0x1c   :  { %572 = vmatpush3.bf16.xpose.msk.msra.mxu0 %vm668_vm1, %v570_v24 }
  0x1d   :  { %573 = vmatprep.subr.bf16.mxu0 %v625_v0 }
  0x24   :  { %576 = vmatpush3.bf16.xpose.msk.msra.mxu0 %vm668_vm1, %v574_v28 }
  0x25   :  { %577 = vmatprep.subr.bf16.mxu0 %v625_v0 }
  0x2c   :  { %580 = vmatpush3.bf16.xpose.msk.msra.mxu0 %vm668_vm1, %v578_v31 }
  0x2d   :  { %581 = vmatprep.subr.bf16.mxu0 %v625_v0 }
  0x34   :  { %584 = vmatpush3.bf16.xpose.msk.msra.mxu0 %vm668_vm1, %v582_v34 }
  0x35   :  { %585 = vmatprep.subr.bf16.mxu0 %v625_v0 }
  0x3c   :  { %588 = vmatpush3.bf16.xpose.msk.msra.mxu0 %vm668_vm1, %v586_v37 }
  0x43   :  { %510 = vmatmul.mubr.msk.f32.vlgmr.msra.gmra.mrb[0].mxu0 %vm99_vm0, %v36_v38 }
  0x44   :  { %512 = vmatprep.mubr.msk.f32.mxu0 %vm626_vm2, %v627_v4 }
  0x47   :  { %513 = vmatmul.mubr.msk.f32.gmra.mrb[2].mxu0 %vm99_vm0, %v37_v39 }
  0x48   :  { %515 = vmatprep.mubr.msk.f32.mxu0 %vm626_vm2, %v627_v4 }
  0x4b   :  { %516 = vmatmul.mubr.msk.f32.gmra.mrb[4].mxu0 %vm99_vm0, %v38_v40 }
  0x4c   :  { %518 = vmatprep.mubr.msk.f32.mxu0 %vm626_vm2, %v627_v4 }
  0x4f   :  { %519 = vmatmul.mubr.msk.f32.gmra.mrb[6].mxu0 %vm99_vm0, %v39_v41 }
  0x50   :  { %521 = vmatprep.mubr.msk.f32.mxu0 %vm626_vm2, %v627_v4 }
  0x53   :  { %522 = vmatmul.mubr.msk.f32.gmra.mrb[8].mxu0 %vm99_vm0, %v40_v42 }
  0x54   :  { %524 = vmatprep.mubr.msk.f32.mxu0 %vm626_vm2, %v627_v4 }
  0x57   :  { %525 = vmatmul.mubr.msk.f32.gmra.mrb[10].mxu0 %vm99_vm0, %v41_v43 }
  0x58   :  { %527 = vmatprep.mubr.msk.f32.mxu0 %vm626_vm2, %v627_v4 }
  0x5b   :  { %528 = vmatmul.mubr.msk.f32.gmra.mrb[12].mxu0 %vm99_vm0, %v42_v44 }
  0x5c   :  { %530 = vmatprep.mubr.msk.f32.mxu0 %vm626_vm2, %v627_v4 }
  0x5f   :  { %531 = vmatmul.mubr.msk.f32.gmra.mrb[14].mxu0 %vm99_vm0, %v43_v45 }
  0x60   :  { %533 = vmatprep.mubr.msk.f32.mxu0 %vm626_vm2, %v627_v4 }
  0x63   :  { %534 = vmatmul.mubr.msk.f32.gmra.mrb[16].mxu0 %vm99_vm0, %v44_v46 }
  0x83   :  { %v57_v47 = vpop.permute.xlu0 %56 }
  0x84   :  { %v67_v56 = vpop.permute.xlu1 %66 }
  0x87   :  { %v62_v52 = vpop.permute.xlu0 %61 }
  0x88   :  { %v72_v62 = vpop.permute.xlu1 %71 }
  0x8b   :  { %v77_v6 = vpop.permute.xlu0 %76 }
  0x8c   :  { %v82_v15 = vpop.permute.xlu1 %81 }
  0x8f   :  { %v87_v24 = vpop.permute.xlu0 %86 }
  0x90   :  { %v92_v33 = vpop.permute.xlu1 %91 }
  0x93   :  { %v97_v43 = vpop.permute.xlu0 %96 }
 0x116   :  { %v241_v48 = vpop.f32.mrb[0].mxu0 }
 0x117   :  { %v242_v49 = vadd.f32 %v241_v48, %v57_v47  ;;  %v511_v50 = vpop.f32.mrb[1].mxu0 }
 0x119   :  { %v294_v51 = vmul.f32 0.70710677, %v242_v49  ;;  %v285_v13 = vmul.f32 0.5, %v242_v49 }
 0x11a   :  { %v246_v53 = vpop.f32.mrb[2].mxu0 }
 0x11b   :  { %607 = verf.f32 %v294_v51  ;;  %v247_v54 = vadd.f32 %v246_v53, %v62_v52  ;;  %v514_v55 = vpop.f32.mrb[3].mxu0 }
 0x11d   :  { %v295_v57 = vmul.f32 0.70710677, %v247_v54  ;;  %v286_v14 = vmul.f32 0.5, %v247_v54 }
 0x11e   :  { %v251_v58 = vpop.f32.mrb[4].mxu0 }
 0x11f   :  { %609 = verf.f32 %v295_v57  ;;  %v252_v59 = vadd.f32 %v251_v58, %v67_v56  ;;  %v517_v60 = vpop.f32.mrb[5].mxu0 }
 0x121   :  { %v296_v61 = vmul.f32 0.70710677, %v252_v59  ;;  %v287_v32 = vmul.f32 0.5, %v252_v59 }
 0x122   :  { %v256_v63 = vpop.f32.mrb[6].mxu0 }
 0x123   :  { %611 = verf.f32 %v296_v61  ;;  %v257_v1 = vadd.f32 %v256_v63, %v72_v62  ;;  %v520_v2 = vpop.f32.mrb[7].mxu0 }
 0x125   :  { %v608_v3 = vpop.eup %607  ;;  %v297_v5 = vmul.f32 0.70710677, %v257_v1  ;;  %v288_v34 = vmul.f32 0.5, %v257_v1 }
 0x126   :  { %v261_v7 = vpop.f32.mrb[8].mxu0  ;;  %v312_v10 = vadd.f32 1.0, %v608_v3 }
 0x127   :  { %613 = verf.f32 %v297_v5  ;;  %v262_v8 = vadd.f32 %v261_v7, %v77_v6  ;;  %v523_v9 = vpop.f32.mrb[9].mxu0 }
 0x128   :  { %v321_v20 = vmul.f32 %v312_v10, %v285_v13 }
 0x129   :  { %v610_v11 = vpop.eup %609  ;;  %v298_v12 = vmul.f32 0.70710677, %v262_v8  ;;  %v289_v51 = vmul.f32 0.5, %v262_v8  ;;  %v330_v8 = vld [vmem:[%s838_s3] sm:$0x7] }
 0x12a   :  { %v266_v16 = vpop.f32.mrb[10].mxu0  ;;  %v313_v17 = vadd.f32 1.0, %v610_v11 }
 0x12b   :  { %615 = verf.f32 %v298_v12  ;;  %v267_v18 = vadd.f32 %v266_v16, %v82_v15  ;;  %v526_v19 = vpop.f32.mrb[11].mxu0 }
 0x12c   :  { %v322_v21 = vmul.f32 %v313_v17, %v286_v14 }
 0x12d   :  { %v612_v22 = vpop.eup %611  ;;  %v299_v23 = vmul.f32 0.70710677, %v267_v18  ;;  %v290_v52 = vmul.f32 0.5, %v267_v18 }
 0x12e   :  { %v271_v25 = vpop.f32.mrb[12].mxu0  ;;  %v590_v26 = vpack.c.bf16 %v322_v21, %v321_v20  ;;  %v314_v29 = vadd.f32 1.0, %v612_v22 }
 0x12f   :  { %617 = verf.f32 %v299_v23  ;;  %v272_v27 = vadd.f32 %v271_v25, %v87_v24  ;;  %v529_v28 = vpop.f32.mrb[13].mxu0 }
 0x130   :  { %591 = vmatpush3.bf16.msra.mxu1 %v590_v26  ;;  %v323_v39 = vmul.f32 %v314_v29, %v287_v32 }
 0x131   :  { %v614_v30 = vpop.eup %613  ;;  %v300_v31 = vmul.f32 0.70710677, %v272_v27  ;;  %592 = vmatprep.subr.bf16.mxu1 %v625_v0  ;;  %v291_v60 = vmul.f32 0.5, %v272_v27 }
 0x132   :  { %v315_v35 = vadd.f32 1.0, %v614_v30  ;;  %v276_v36 = vpop.f32.mrb[14].mxu0 }
 0x133   :  { %619 = verf.f32 %v300_v31  ;;  %v277_v37 = vadd.f32 %v276_v36, %v92_v33  ;;  %v532_v38 = vpop.f32.mrb[15].mxu0 }
 0x134   :  { %v324_v40 = vmul.f32 %v315_v35, %v288_v34 }
 0x135   :  { %v616_v41 = vpop.eup %615  ;;  %v301_v42 = vmul.f32 0.70710677, %v277_v37  ;;  %v292_v61 = vmul.f32 0.5, %v277_v37 }
 0x136   :  { %v281_v44 = vpop.f32.mrb[16].mxu0  ;;  %v593_v45 = vpack.c.bf16 %v324_v40, %v323_v39  ;;  %v316_v48 = vadd.f32 1.0, %v616_v41 }
 0x137   :  { %621 = verf.f32 %v301_v42  ;;  %v282_v46 = vadd.f32 %v281_v44, %v97_v43  ;;  %v535_v47 = vpop.f32.mrb[17].mxu0 }
 0x138   :  { %594 = vmatpush3.bf16.msra.mxu1 %v593_v45  ;;  %v325_v54 = vmul.f32 %v316_v48, %v289_v51 }
 0x139   :  { %v618_v49 = vpop.eup %617  ;;  %v302_v50 = vmul.f32 0.70710677, %v282_v46  ;;  %595 = vmatprep.subr.bf16.mxu1 %v625_v0  ;;  %v293_v6 = vmul.f32 0.5, %v282_v46 }
 0x13a   :  { %v317_v53 = vadd.f32 1.0, %v618_v49 }
 0x13b   :  { %623 = verf.f32 %v302_v50 }
 0x13c   :  { %v326_v55 = vmul.f32 %v317_v53, %v290_v52 }
 0x13d   :  { %v620_v56 = vpop.eup %619 }
 0x13e   :  { %v596_v57 = vpack.c.bf16 %v326_v55, %v325_v54  ;;  %v318_v58 = vadd.f32 1.0, %v620_v56 }
 0x140   :  { %597 = vmatpush3.bf16.msra.mxu1 %v596_v57  ;;  %v327_v63 = vmul.f32 %v318_v58, %v291_v60 }
 0x141   :  { %v622_v59 = vpop.eup %621  ;;  %598 = vmatprep.subr.bf16.mxu1 %v625_v0  ;;  %v335_v0 = vpop.permute.xlu1 %334 }
 0x142   :  { %v319_v62 = vadd.f32 1.0, %v622_v59 }
 0x144   :  { %v328_v1 = vmul.f32 %v319_v62, %v292_v61 }
 0x145   :  { %v624_v2 = vpop.eup %623 }
 0x146   :  { %v320_v3 = vadd.f32 1.0, %v624_v2  ;;  %v599_v5 = vpack.c.bf16 %v328_v1, %v327_v63 }
 0x148   :  { %600 = vmatpush3.bf16.msra.mxu1 %v599_v5  ;;  %v329_v7 = vmul.f32 %v320_v3, %v293_v6 }
 0x149   :  { %552 = vmatprep.subr.mxu1 %v627_v4 }
 0x14c   :  { %553 = vmatpush3.msra.mxu1 %v329_v7 }
 0x14d   :  { %555 = vmatmul.mubr.msk.f32.vlgmr.msra.gmra.mrb[0].mxu1 %vm337_vm3, %v330_v8 }
 0x220   :  { %v407_v9 = vpop.f32.mrb[0].mxu1 }
 0x221   :  { %v408_v10 = vadd.f32 %v407_v9, %v335_v0  ;;  %v556_v11 = vpop.f32.mrb[1].mxu1 }
 0x223   :  { %411 = vst [vmem:[%s839_s5] sm:$0x7] %v408_v10 }

</bundles_post_ra>
